<compile_context>
chip_gen: v7x
topology: tpu7x:2x2x1
jax: 0.10.0
libtpu: 0.0.40
codegen_flags: <defaults>
</compile_context>

<pallas_src>
import functools

import jax
import jax.numpy as jnp
from jax import lax
from jax.experimental import pallas as pl
from jax.experimental.pallas import tpu as pltpu

# ---------------------------------------------------------------------------
# Problem sizes (small, consistent with the module's shapes)
# ---------------------------------------------------------------------------
L = 8                # observation_space.shape[0]  (number of "layers")
F = 4                # per-layer feature width -> obs shape (L, F)
IN_DIM = L * F       # flattened neural_module input (32)
H = 32               # neural_module output_dimension -> self._input_size
N_HEADS = 29         # fused scalar heads
BETA_LO, BETA_HI = 17, 29
LOGIT_OFF = N_HEADS  # modify_layernum logits live in lanes [29, 29+L)
OUT_W = 128          # lane-dense packed output / fused-weight width
B = 8                # batch of observations (one f32 sublane tile)


# ---------------------------------------------------------------------------
# Pallas kernel: gridless, 3 VMEM inputs, 1 lane-dense VMEM output.
# ---------------------------------------------------------------------------
def _actor_kernel(x_ref, wp1_ref, wp2_ref, out_ref):
    # stage 1: neural_module  feat = tanh(x @ W1 + b1)
    w1 = wp1_ref[0:IN_DIM, :]            # (IN_DIM, H)
    b1 = wp1_ref[IN_DIM:IN_DIM + 1, :]   # (1, H)
    feat = jnp.tanh(
        jnp.dot(x_ref[...], w1, preferred_element_type=jnp.float32) + b1
    )                                    # (B, H)

    # stage 2: all 29 scalar heads + modify_layernum in ONE fused matmul
    w2 = wp2_ref[0:H, :]                 # (H, OUT_W) lane-dense, zero-padded
    b2 = wp2_ref[H:H + 1, :]             # (1, OUT_W)
    raw = jnp.dot(feat, w2, preferred_element_type=jnp.float32) + b2   # (B, OUT_W)

    # softmax over the modify_layernum logit lanes [29, 37), computed on the
    # full vreg width (non-logit lanes -> -inf -> exp 0) so no sub-128 slicing.
    lane = lax.broadcasted_iota(jnp.int32, raw.shape, 1)
    is_logit = (lane >= LOGIT_OFF) & (lane < LOGIT_OFF + L)
    neg_inf = jnp.float32(-jnp.inf)
    masked = jnp.where(is_logit, raw, neg_inf)
    m = jnp.max(masked, axis=-1, keepdims=True)
    e = jnp.exp(masked - m)
    sm = e * pl.reciprocal(jnp.sum(e, axis=-1, keepdims=True), approx=True)

    # pack: lanes 0:29 raw heads, 29:37 softmax, rest zero  -> one unmasked store
    out_ref[...] = jnp.where(is_logit, sm, jnp.where(lane < N_HEADS, raw, 0.0))


def _pallas_forward(x_flat, wp1, wp2):
    bsz = x_flat.shape[0]
    flops = 2 * bsz * IN_DIM * H + 2 * bsz * H * OUT_W + 8 * bsz * OUT_W
    transcendentals = bsz * H + bsz * OUT_W            # tanh + exp
    bytes_accessed = 4 * (x_flat.size + wp1.size + wp2.size + bsz * OUT_W)

    vmem = pl.BlockSpec(memory_space=pltpu.MemorySpace.VMEM)
    return pl.pallas_call(
        _actor_kernel,
        out_shape=jax.ShapeDtypeStruct((bsz, OUT_W), jnp.float32),
        in_specs=[vmem, vmem, vmem],
        out_specs=vmem,
        cost_estimate=pl.CostEstimate(
            flops=flops,
            transcendentals=transcendentals,
            bytes_accessed=bytes_accessed,
        ),
    )(x_flat, wp1, wp2)


# ---------------------------------------------------------------------------
# Wrapper: kernel + scalar glue (dict assembly). Batched over B observations.
# ---------------------------------------------------------------------------
@jax.jit
def actor_policy_weights(obs, wp1, wp2):
    """obs: (B, L, F) observations; returns dict of (batched) policy weights."""
    obs = obs.astype(jnp.float32)                  # input.float()
    bsz = obs.shape[0]
    x_flat = obs.reshape(bsz, IN_DIM)              # input.view(-1, dim)

    packed = _pallas_forward(x_flat, wp1, wp2)     # (B, 128)
    heads = packed[:, :N_HEADS]                    # (B, 29) raw head outputs
    sm = packed[:, LOGIT_OFF:LOGIT_OFF + L]        # (B, L) softmax(modify_layernum)
    col0 = obs[:, :, 0]                            # (B, L) == input[:, 0]

    ninf = jnp.float32(-jnp.inf)
    wd = {}
    wd["w_pre"] = heads[:, 0:1]
    # hard -inf overrides (the `if True:` block in the torch code)
    wd["w_swap"] = ninf
    wd["w_popf"] = ninf
    wd["w_popb"] = ninf
    wd["ninf"] = ninf
    # w_modify -> -inf when input[0, 0] == 0
    wd["w_modify"] = jnp.where(col0[:, 0:1] == 0.0, ninf, heads[:, 4:5])
    for i in range(12):
        wd[f"w_pre_{i:02d}"] = heads[:, 5 + i:6 + i]

    # raw Beta-head linear outputs (torch keeps these raw in the dict)
    for i in range(3):
        wd[f"param_{i:02d}_alpha"] = heads[:, 17 + 2 * i:18 + 2 * i]
        wd[f"param_{i:02d}_beta"] = heads[:, 18 + 2 * i:19 + 2 * i]
        wd[f"shift_{i:02d}_alpha"] = heads[:, 23 + 2 * i:24 + 2 * i]
        wd[f"shift_{i:02d}_beta"] = heads[:, 24 + 2 * i:25 + 2 * i]

    # softmax(modify_layernum) * ~(input[:, 0] == 0)   (mask applied post-normalize,
    # exactly as in the torch code)
    wd["w_modify_layer"] = sm * (col0 != 0.0).astype(jnp.float32)

    min_index = jnp.argmin(col0, axis=1)                                   # (B,)
    min_val = jnp.take_along_axis(col0, min_index[:, None], axis=1)[:, 0]  # (B,)
    adjust = jnp.float32(0.5)
    wd["w_swap_mindex"] = jnp.float32(0.0) - adjust
    wd["w_swap_maxdex"] = -adjust + jnp.where(
        min_val == 0.0, min_index.astype(jnp.float32), jnp.float32(L))

    # Beta distribution parameters (alpha, beta) = |linear| + 1.
    # TODO(synk): torch.distributions.beta.Beta objects themselves have no
    #             Pallas/JAX-array equivalent here; only their parameters are built.
    for i in range(3):
        wd[f"p_{i:02d}"] = (jnp.abs(wd[f"param_{i:02d}_alpha"]) + 1.0,
                            jnp.abs(wd[f"param_{i:02d}_beta"]) + 1.0)
        wd[f"shift_{i:02d}"] = (jnp.abs(wd[f"shift_{i:02d}_alpha"]) + 1.0,
                                jnp.abs(wd[f"shift_{i:02d}_beta"]) + 1.0)

    # TODO(synk): TreePolicy(DecisionTree, weight_dict).sample / .log_prob are
    #             external classes not provided in the module source.
    return wd


# ---------------------------------------------------------------------------
# Deterministic parameter init (kaiming-normal for dim>1 params, as in __init__)
# and host-side packing into the fused / lane-dense layout.
# ---------------------------------------------------------------------------
def init_params(key):
    k1, k2, k3, kb1, kb2, kb3 = jax.random.split(key, 6)

    def kaiming(k, shape, fan_in):
        return jax.random.normal(k, shape, jnp.float32) * jnp.sqrt(2.0 / fan_in)

    def bias(k, shape, fan_in):
        bound = 1.0 / jnp.sqrt(fan_in)
        return jax.random.uniform(k, shape, jnp.float32, -bound, bound)

    return {
        "w1": kaiming(k1, (IN_DIM, H), IN_DIM),        # neural_module Linear
        "b1": bias(kb1, (1, H), IN_DIM),
        "wh": kaiming(k2, (H, N_HEADS), H),            # 29 fused Linear(H, 1) heads
        "bh": bias(kb2, (1, N_HEADS), H),
        "wm": kaiming(k3, (H, L), H),                  # modify_layernum: Linear(H, L)
        "bm": bias(kb3, (1, L), H),
    }


def pack_params(params):
    """Pack W1/b1 -> (IN_DIM+1, H) and [Wh|Wm]/[bh|bm] -> (H+1, 128) lane-dense."""
    wp1 = jnp.concatenate([params["w1"], params["b1"]], axis=0)       # (33, 32)

    w2 = jnp.zeros((H, OUT_W), jnp.float32)
    w2 = w2.at[:, 0:N_HEADS].set(params["wh"])
    w2 = w2.at[:, LOGIT_OFF:LOGIT_OFF + L].set(params["wm"])
    b2 = jnp.zeros((1, OUT_W), jnp.float32)
    b2 = b2.at[:, 0:N_HEADS].set(params["bh"])
    b2 = b2.at[:, LOGIT_OFF:LOGIT_OFF + L].set(params["bm"])
    wp2 = jnp.concatenate([w2, b2], axis=0)                           # (33, 128)
    return wp1, wp2


if __name__ == "__main__":
    key = jax.random.PRNGKey(0)
    k_obs, k_par = jax.random.split(key)

    # batch of B observations, each (L, F) = observation_space.shape
    obs = jax.random.normal(k_obs, (B, L, F), jnp.float32)
    params = init_params(k_par)
    wp1, wp2 = pack_params(params)

    wd = actor_policy_weights(obs, wp1, wp2)
    jax.block_until_ready(wd["w_modify_layer"])
    jax.block_until_ready(wd["w_pre"])
    jax.block_until_ready(wd["p_00"][0])
    print("KERNEL_OK")
</pallas_src>

<mosaic_0001>
module attributes {stable_mosaic.version = 11 : i64} {
  func.func @_actor_kernel(%arg0: memref<8x32xf32, #tpu.memory_space<vmem>>, %arg1: memref<33x32xf32, #tpu.memory_space<vmem>>, %arg2: memref<33x128xf32, #tpu.memory_space<vmem>>, %arg3: memref<8x128xf32, #tpu.memory_space<vmem>>) attributes {dimension_semantics = [], scalar_prefetch = 0 : i64, scratch_operands = 0 : i64, tpu.core_type = #tpu.core_type<tc>} {
    %c0 = arith.constant 0 : index
    %c0_0 = arith.constant 0 : index
    %0 = vector.load %arg1[%c0, %c0_0] : memref<33x32xf32, #tpu.memory_space<vmem>>, vector<32x32xf32>
    %c32 = arith.constant 32 : index
    %c0_1 = arith.constant 0 : index
    %1 = vector.load %arg1[%c32, %c0_1] : memref<33x32xf32, #tpu.memory_space<vmem>>, vector<1x32xf32>
    %c0_2 = arith.constant 0 : index
    %c0_3 = arith.constant 0 : index
    %2 = vector.load %arg0[%c0_2, %c0_3] : memref<8x32xf32, #tpu.memory_space<vmem>>, vector<8x32xf32>
    %cst = arith.constant dense<0.000000e+00> : vector<8x32xf32>
    %3 = tpu.matmul %2, %0, %cst {dimension_numbers = #tpu.dot_dimension_numbers<[1], [0], [0], [1], [0, 0, 1, 1], [], []>} : vector<8x32xf32>, vector<32x32xf32>, vector<8x32xf32> -> vector<8x32xf32>
    %4 = vector.broadcast %1 : vector<1x32xf32> to vector<8x32xf32>
    %5 = arith.addf %3, %4 : vector<8x32xf32>
    %6 = math.tanh %5 : vector<8x32xf32>
    %c0_4 = arith.constant 0 : index
    %c0_5 = arith.constant 0 : index
    %7 = vector.load %arg2[%c0_4, %c0_5] : memref<33x128xf32, #tpu.memory_space<vmem>>, vector<32x128xf32>
    %c32_6 = arith.constant 32 : index
    %c0_7 = arith.constant 0 : index
    %8 = vector.load %arg2[%c32_6, %c0_7] : memref<33x128xf32, #tpu.memory_space<vmem>>, vector<1x128xf32>
    %cst_8 = arith.constant dense<0.000000e+00> : vector<8x128xf32>
    %9 = tpu.matmul %6, %7, %cst_8 {dimension_numbers = #tpu.dot_dimension_numbers<[1], [0], [0], [1], [0, 0, 1, 1], [], []>} : vector<8x32xf32>, vector<32x128xf32>, vector<8x128xf32> -> vector<8x128xf32>
    %10 = vector.broadcast %8 : vector<1x128xf32> to vector<8x128xf32>
    %11 = arith.addf %9, %10 : vector<8x128xf32>
    %12 = tpu.iota {dimensions = array<i32: 1>} : vector<8x128xi32>
    %c29_i32 = arith.constant 29 : i32
    %13 = vector.broadcast %c29_i32 : i32 to vector<8x128xi32>
    %14 = arith.cmpi sge, %12, %13 : vector<8x128xi32>
    %c37_i32 = arith.constant 37 : i32
    %15 = vector.broadcast %c37_i32 : i32 to vector<8x128xi32>
    %16 = arith.cmpi slt, %12, %15 : vector<8x128xi32>
    %17 = arith.andi %14, %16 : vector<8x128xi1>
    %cst_9 = arith.constant 0xFF800000 : f32
    %18 = vector.broadcast %cst_9 : f32 to vector<8x128xf32>
    %19 = arith.select %17, %11, %18 : vector<8x128xi1>, vector<8x128xf32>
    %cst_10 = arith.constant dense<0xFF800000> : vector<8xf32>
    %20 = vector.multi_reduction <maximumf>, %19, %cst_10 [1] : vector<8x128xf32> to vector<8xf32>
    %21 = vector.shape_cast %20 : vector<8xf32> to vector<8x1xf32>
    %22 = vector.broadcast %21 : vector<8x1xf32> to vector<8x128xf32>
    %23 = arith.subf %19, %22 : vector<8x128xf32>
    %24 = math.exp %23 : vector<8x128xf32>
    %cst_11 = arith.constant dense<0.000000e+00> : vector<8xf32>
    %25 = vector.multi_reduction <add>, %24, %cst_11 [1] : vector<8x128xf32> to vector<8xf32>
    %26 = vector.shape_cast %25 : vector<8xf32> to vector<8x1xf32>
    %27 = tpu.reciprocal %26 {approx = true} : vector<8x1xf32> -> vector<8x1xf32>
    %28 = vector.broadcast %27 : vector<8x1xf32> to vector<8x128xf32>
    %29 = arith.mulf %24, %28 : vector<8x128xf32>
    %c29_i32_12 = arith.constant 29 : i32
    %30 = vector.broadcast %c29_i32_12 : i32 to vector<8x128xi32>
    %31 = arith.cmpi slt, %12, %30 : vector<8x128xi32>
    %cst_13 = arith.constant 0.000000e+00 : f32
    %32 = vector.broadcast %cst_13 : f32 to vector<8x128xf32>
    %33 = arith.select %31, %11, %32 : vector<8x128xi1>, vector<8x128xf32>
    %34 = arith.select %17, %29, %33 : vector<8x128xi1>, vector<8x128xf32>
    %c0_14 = arith.constant 0 : index
    %c0_15 = arith.constant 0 : index
    %35 = vector.load %arg3[%c0_14, %c0_15] : memref<8x128xf32, #tpu.memory_space<vmem>>, vector<8x128xf32>
    tpu.vector_store %arg3[%c0_14, %c0_15], %34 {strides = array<i32>} : memref<8x128xf32, #tpu.memory_space<vmem>>, vector<8x128xf32>,
    return
  }
}

</mosaic_0001>

<bundles_post_ra>
// kernel: actor_policy_weights.1
= control target key start
LH: loop header
LB: loop body
LE: loop exit
PB: predicated region body
PF: predicated region fallthrough
CT: control target
= control target key end

     0   :  { %v261_v0 = vmov 0.0|0.0   ;;  %vm262_vm0 = vmmov 0   ;;  %v263_v4 = vmov 0.0   ;;  %vm24_vm1 = vcmask 261120   ;;  %s330_s1 = inlined_call_operand.vmem [shape: f32[33,32], index: 1, kind: input, shape index: {}]   ;;  %s331_s0 = inlined_call_operand.vmem [shape: f32[8,32], index: 0, kind: input, shape index: {}]   ;;  %s332_s2 = inlined_call_operand.vmem [shape: f32[33,128], index: 2, kind: input, shape index: {}]   ;;  %s333_s3 = inlined_call_operand.vmem [shape: f32[8,128], index: 3, kind: output, shape index: {}]  }
   0x1   :  { %240 = vmatprep.subr.bf16.mxu0 %v261_v0  ;;  %v14_v1 = vld [vmem:[%s330_s1] sm:$0xff]  ;;  %v15_v2 = vld [vmem:[%s330_s1 + $0x8] sm:$0xff]  ;;  %v16_v3 = vld [vmem:[%s330_s1 + $0x10] sm:$0xff]  ;;  %226 = vmatprep.mubr.msk.f32.mxu0 %vm262_vm0, %v263_v4  ;;  %v181_v20 = vlaneseq }
   0x2   :  { %v241_v5 = vpack.c.bf16 %v15_v2, %v14_v1  ;;  %v17_v6 = vld [vmem:[%s330_s1 + $0x18] sm:$0xff]  ;;  %246 = vmatprep.subr.bf16.mxu1 %v261_v0  ;;  %237 = vmatprep.mubr.msk.f32.mxu1 %vm262_vm0, %v263_v4  ;;  %v19_v8 = vld [vmem:[%s331_s0] sm:$0xff]  ;;  %v100_v10 = vld [vmem:[%s332_s2 + $0x8] sm:$0xff] }
   0x3   :  { %v244_v7 = vpack.c.bf16 %v17_v6, %v16_v3  ;;  %v99_v9 = vld [vmem:[%s332_s2] sm:$0xff]  ;;  %v101_v11 = vld [vmem:[%s332_s2 + $0x10] sm:$0xff]  ;;  %v102_v13 = vld [vmem:[%s332_s2 + $0x18] sm:$0xff]  ;;  %v182_v21 = vand.u32 127, %v181_v20 }
   0x4   :  { %242 = vmatpush3.bf16.msra.mxu0 %v241_v5  ;;  %v247_v12 = vpack.c.bf16 %v100_v10, %v99_v9  ;;  %v250_v14 = vpack.c.bf16 %v102_v13, %v101_v11  ;;  %v204_v15 = vld [vmem:[%s330_s1 + $0x20] ss:$0 sm:$0xff] }
   0x5   :  { %243 = vmatprep.subr.bf16.mxu0 %v261_v0  ;;  %vm183_vm2 = vcmp.ge.s32.totalorder %v182_v21, 29  ;;  %vm184_vm3 = vcmp.lt.s32.totalorder %v182_v21, 37  ;;  %v206_v22 = vld [vmem:[%s332_s2 + $0x20] ss:$0 sm:$0xff]  ;;  %vm196_vm4 = vcmp.lt.s32.totalorder %v182_v21, 29 }
   0x6   :  { %248 = vmatpush3.bf16.msra.mxu1 %v247_v12  ;;  %vm319_vm5 = vmand %vm183_vm2, %vm184_vm3 }
   0x7   :  { %249 = vmatprep.subr.bf16.mxu1 %v261_v0 }
   0x8   :  { %245 = vmatpush3.bf16.msra.mxu0 %v244_v7 }
   0xa   :  { %251 = vmatpush3.bf16.msra.mxu1 %v250_v14 }
   0xb   :  { %227 = vmatmul.mubr.msk.f32.vlgmr.msra.gmra.mrb[0].mxu0 %vm24_vm1, %v19_v8 }
  0xde   :  { %v94_v16 = vpop.f32.mrb[0].mxu0 }
  0xdf   :  { %v95_v17 = vadd.f32 %v204_v15, %v94_v16  ;;  %v228_v18 = vpop.f32.mrb[1].mxu0 }
  0xe1   :  { %255 = vtanh.f32 %v95_v17 }
  0xeb   :  { %v256_v19 = vpop.eup %255 }
  0xec   :  { %238 = vmatmul.mubr.msk.f32.vlgmr.msra.gmra.mrb[0].mxu1 %vm24_vm1, %v256_v19 }
 0x1bf   :  { %v177_v23 = vpop.f32.mrb[0].mxu1 }
 0x1c0   :  { %v178_v25 = vadd.f32 %v206_v22, %v177_v23  ;;  %v239_v26 = vpop.f32.mrb[1].mxu1 }
 0x1c2   :  { %v197_v27 = vsel %vm196_vm4, %v178_v25, 0.0  ;;  %v186_v28 = vsel %vm319_vm5, %v178_v25, -inf }
 0x1c3   :  { %187 = vmax.xlane.f32.xlu0 %v186_v28 }
 0x250   :  { %v188_v29 = vpop.xlane.xlu0 %187 }
 0x251   :  { %v189_v30 = vsub.f32 %v186_v28, %v188_v29 }
 0x253   :  { %v190_v31 = vmul.f32 1.442695, %v189_v30 }
 0x255   :  { %257 = vpow2.f32 %v190_v31 }
 0x25f   :  { %v258_v32 = vpop.eup %257 }
 0x260   :  { %192 = vadd.xlane.f32.xlu0 %v258_v32 }
 0x2ed   :  { %v193_v33 = vpop.xlane.xlu0 %192 }
 0x2ee   :  { %259 = vrcp.f32 %v193_v33 }
 0x2f8   :  { %v260_v34 = vpop.eup %259 }
 0x2f9   :  { %v195_v35 = vmul.f32 %v260_v34, %v258_v32 }
 0x2fb   :  { %v198_v36 = vsel %vm319_vm5, %v195_v35, %v197_v27 }
 0x2fc   :  { %199 = vst [vmem:[%s333_s3] sm:$0xff] %v198_v36 }

</bundles_post_ra>
